<compile_context>
chip_gen: v7x
topology: tpu7x:2x2x1
jax: 0.10.0
libtpu: 0.0.40
codegen_flags: <defaults>
</compile_context>

<pallas_src>
import functools

import jax
import jax.numpy as jnp
from jax.experimental import pallas as pl
from jax.experimental.pallas import tpu as pltpu

L1_WEIGHT = 1e-4                     # the 0.0001 in the module's forward
_LANES = 128
_TARGET_BLOCK_BYTES = 2 * 1024 * 1024   # ~2 MiB per input block (x2 inputs x2 buffers ≈ 8 MiB)
_NUM_CORES = 2                       # v7x megacore split; harmless on 1-TC chips (v5e/v6e)
_L1_DEDICATED_MIN_ELEMS = 8192       # below this, a concat copy is cheaper than a kernel launch


# --------------------------------------------------------------------------- #
# Grid planning helpers.                                                       #
# --------------------------------------------------------------------------- #
def _plan_rows(rows, row_bytes, block_bytes=_TARGET_BLOCK_BYTES):
    """Pick (row_tile, nblocks, cores, steps) for a (rows, W) slab by byte budget."""
    budget_rows = max(int(block_bytes // max(row_bytes, 1)), 8)
    if budget_rows >= rows:
        row_tile = rows                      # full dim: no 8-multiple requirement
    else:
        row_tile = (budget_rows // 8) * 8    # >= 8, multiple of 8
    nblocks = pl.cdiv(rows, row_tile)
    cores = _NUM_CORES if nblocks >= _NUM_CORES else 1
    steps = pl.cdiv(nblocks, cores)
    return row_tile, nblocks, cores, steps


def _row_block_map(nblocks, cores, steps):
    """Index map over row blocks; clamps so revisited steps never DMA past the array."""
    if cores * steps == nblocks:
        return lambda c, i: (c * steps + i, 0)
    return lambda c, i: (jnp.minimum(c * steps + i, nblocks - 1), 0)


def _accumulate(acc_ref, vals, blk, *, rows, row_tile, nblocks, cores, steps):
    """Add the per-step sublane sum of `vals` into acc_ref, masking OOB rows / revisits."""
    ragged = (rows % row_tile) != 0       # trace-time flag
    revisit = (cores * steps) != nblocks  # trace-time flag

    def add(v):
        # (row_tile, W) -> (1, W) sublane reduce rides the XLU slot; broadcast into (1,1,W).
        acc_ref[...] += jnp.sum(v, axis=0, keepdims=True)

    if ragged:
        last = nblocks - 1

        @pl.when(blk < last)                # steady-state blocks: no mask work at all
        def _():
            add(vals)

        @pl.when(blk == last)               # last real block: select (NOT multiply) OOB rows
        def _():
            row = last * row_tile + jax.lax.broadcasted_iota(jnp.int32, vals.shape, 0)
            add(jnp.where(row < rows, vals, 0.0))
    elif revisit:
        @pl.when(blk < nblocks)             # revisited (clamped) blocks: skip accumulation
        def _():
            add(vals)
    else:
        add(vals)


# --------------------------------------------------------------------------- #
# BCE-with-logits (pos_weight), sum over all elements (mean done in wrapper).  #
# --------------------------------------------------------------------------- #
def _bce_sum_kernel(x_ref, y_ref, pw_ref, out_ref, acc_ref, *,
                    rows, row_tile, nblocks, cores, steps):
    c = pl.program_id(0)
    i = pl.program_id(1)
    blk = c * steps + i

    @pl.when(i == 0)
    def _():
        acc_ref[...] = jnp.zeros_like(acc_ref)

    x = x_ref[...].astype(jnp.float32)
    y = y_ref[...].astype(jnp.float32)
    pw = pw_ref[...].astype(jnp.float32)          # (1, W) broadcasts over rows

    # Numerically stable softplus(x) = max(x, 0) + log(1 + exp(-|x|)); exp/log hit the EUP.
    sp_pos = jnp.maximum(x, 0.0) + jnp.log(1.0 + jnp.exp(-jnp.abs(x)))
    # loss = pw*y*softplus(-x) + (1-y)*softplus(x), with softplus(-x) = softplus(x) - x.
    loss = pw * y * (sp_pos - x) + (1.0 - y) * sp_pos

    _accumulate(acc_ref, loss, blk, rows=rows, row_tile=row_tile,
                nblocks=nblocks, cores=cores, steps=steps)

    @pl.when(i == steps - 1)
    def _():
        out_ref[...] = acc_ref[...]                # per-core partial (1, 1, W) row


def _bce_with_logits_sum(inputs, targets, pos_weight, *, block_bytes=_TARGET_BLOCK_BYTES):
    B, C = inputs.shape
    pwv = jnp.broadcast_to(jnp.asarray(pos_weight, jnp.float32).reshape(-1), (C,))
    N = B * C

    if C < _LANES and _LANES % C == 0 and N % _LANES == 0:
        # Lane-dense path: flatten (B, C) -> (N/128, 128) (free reshape, no pad);
        # pos_weight tiles exactly across the 128 lanes because 128 % C == 0.
        W = _LANES
        rows = N // _LANES
        x2 = inputs.reshape(rows, W)
        y2 = targets.reshape(rows, W)
        pw_row = jnp.tile(pwv, W // C).reshape(1, W)
    else:
        # General path: (tb, C) blocks.  Lane-dense whenever C % 128 == 0; correct fallback
        # otherwise.
        W = C
        rows = B
        x2 = inputs
        y2 = targets
        pw_row = pwv.reshape(1, W)

    itemsize = max(jnp.dtype(inputs.dtype).itemsize, jnp.dtype(targets.dtype).itemsize)
    row_tile, nblocks, cores, steps = _plan_rows(rows, W * itemsize, block_bytes)
    idx = _row_block_map(nblocks, cores, steps)

    kernel = functools.partial(_bce_sum_kernel, rows=rows, row_tile=row_tile,
                               nblocks=nblocks, cores=cores, steps=steps)
    partials = pl.pallas_call(
        kernel,
        out_shape=jax.ShapeDtypeStruct((cores, 1, W), jnp.float32),
        grid=(cores, steps),
        in_specs=[
            pl.BlockSpec((row_tile, W), idx),
            pl.BlockSpec((row_tile, W), idx),
            pl.BlockSpec((1, W), lambda c, i: (0, 0)),
        ],
        out_specs=pl.BlockSpec((1, 1, W), lambda c, i: (c, 0, 0)),
        scratch_shapes=[pltpu.VMEM((1, 1, W), jnp.float32)],
        compiler_params=pltpu.CompilerParams(
            dimension_semantics=("parallel", "arbitrary")),
    )(x2, y2, pw_row)
    return jnp.sum(partials)                       # tiny (cores*W) cross-lane reduce in XLA


# --------------------------------------------------------------------------- #
# L1 regularizer: sum(|p|) over all params.                                    #
# --------------------------------------------------------------------------- #
def _abs_sum_kernel(p_ref, out_ref, acc_ref, *, rows, row_tile, nblocks, cores, steps):
    c = pl.program_id(0)
    i = pl.program_id(1)
    blk = c * steps + i

    @pl.when(i == 0)
    def _():
        acc_ref[...] = jnp.zeros_like(acc_ref)

    vals = jnp.abs(p_ref[...].astype(jnp.float32))
    _accumulate(acc_ref, vals, blk, rows=rows, row_tile=row_tile,
                nblocks=nblocks, cores=cores, steps=steps)

    @pl.when(i == steps - 1)
    def _():
        out_ref[...] = acc_ref[...]


def _abs_sum_2d(mat, *, block_bytes=_TARGET_BLOCK_BYTES):
    """sum(|mat|) for a (rows, W) slab, W lane-dense (typically 128)."""
    rows, W = mat.shape
    row_tile, nblocks, cores, steps = _plan_rows(
        rows, W * jnp.dtype(mat.dtype).itemsize, block_bytes)
    idx = _row_block_map(nblocks, cores, steps)

    kernel = functools.partial(_abs_sum_kernel, rows=rows, row_tile=row_tile,
                               nblocks=nblocks, cores=cores, steps=steps)
    partials = pl.pallas_call(
        kernel,
        out_shape=jax.ShapeDtypeStruct((cores, 1, W), jnp.float32),
        grid=(cores, steps),
        in_specs=[pl.BlockSpec((row_tile, W), idx)],
        out_specs=pl.BlockSpec((1, 1, W), lambda c, i: (c, 0, 0)),
        scratch_shapes=[pltpu.VMEM((1, 1, W), jnp.float32)],
        compiler_params=pltpu.CompilerParams(
            dimension_semantics=("parallel", "arbitrary")),
    )(mat)
    return jnp.sum(partials)


def _l1_reg_sum(params):
    total = jnp.float32(0.0)
    small_by_dtype = {}
    for p in params:
        n = int(p.size)
        if n == 0:
            continue
        flat = jnp.ravel(p)                                    # free layout change
        if n >= _L1_DEDICATED_MIN_ELEMS:
            pad = (-n) % _LANES
            if pad:
                # TODO(synk): mask the ragged tail in-kernel for huge non-128-multiple
                # params instead of this single pad copy.
                flat = jnp.concatenate([flat, jnp.zeros((pad,), flat.dtype)])
            total = total + _abs_sum_2d(flat.reshape(-1, _LANES))   # native dtype, no copy
        else:
            small_by_dtype.setdefault(flat.dtype, []).append(flat)

    for dt, chunks in small_by_dtype.items():
        n = sum(c.shape[0] for c in chunks)
        pad = (-n) % _LANES
        if pad:
            chunks.append(jnp.zeros((pad,), dt))               # fold zero-pad into the concat
        flat = chunks[0] if len(chunks) == 1 else jnp.concatenate(chunks)
        total = total + _abs_sum_2d(flat.reshape(-1, _LANES))
    return total


# --------------------------------------------------------------------------- #
# Public wrapper (matches BCEl1RegLoss.forward).                               #
# --------------------------------------------------------------------------- #
def bce_l1_reg_loss(inputs, targets, params, pos_weight):
    B, C = inputs.shape
    bce = _bce_with_logits_sum(inputs, targets, pos_weight) / (B * C)   # 'mean' reduction
    l1 = _l1_reg_sum(params)                                            # L1Loss(sum) vs zeros
    return bce + L1_WEIGHT * l1


# --------------------------------------------------------------------------- #
# Pure-JAX reference.                                                          #
# --------------------------------------------------------------------------- #
def _reference(inputs, targets, params, pos_weight):
    x = inputs.astype(jnp.float32)
    y = targets.astype(jnp.float32)
    pw = jnp.asarray(pos_weight, jnp.float32)
    log_sig = -jnp.logaddexp(0.0, -x)     # log sigmoid(x)
    log_one_m = -jnp.logaddexp(0.0, x)    # log (1 - sigmoid(x))
    bce = -jnp.mean(pw * y * log_sig + (1.0 - y) * log_one_m)
    l1 = sum(jnp.sum(jnp.abs(p)) for p in params)
    return bce + L1_WEIGHT * l1


if __name__ == "__main__":
    key = jax.random.PRNGKey(0)
    k_in, k_tg, k_pw, k_p1, k_p2, k_p3, k_p4 = jax.random.split(key, 7)

    B, C = 16, 32
    inputs = jax.random.normal(k_in, (B, C), dtype=jnp.float32)           # logits
    targets = jax.random.bernoulli(k_tg, 0.5, (B, C)).astype(jnp.float32)
    pos_weight = jax.random.uniform(k_pw, (C,), minval=0.5, maxval=2.0, dtype=jnp.float32)
    params = [
        jax.random.normal(k_p1, (64, 128), dtype=jnp.float32),   # large: dedicated, copy-free
        jax.random.normal(k_p2, (32, 64), dtype=jnp.float32),    # small: concat bucket
        jax.random.normal(k_p3, (64,), dtype=jnp.float32),
        jax.random.normal(k_p4, (4, 3, 3, 8), dtype=jnp.float32),
    ]

    loss_fn = jax.jit(bce_l1_reg_loss)
    loss = loss_fn(inputs, targets, params, pos_weight)
    jax.block_until_ready(loss)

    ref = _reference(inputs, targets, params, pos_weight)
    assert jnp.allclose(loss, ref, rtol=1e-5, atol=1e-5), (loss, ref)

    # Path coverage: dense 128-lane slab + ragged last block + 2-way split + clamped map.
    B2 = 200
    x2 = jax.random.normal(k_in, (B2, C), dtype=jnp.float32)
    y2 = jax.random.bernoulli(k_tg, 0.5, (B2, C)).astype(jnp.float32)
    got2 = _bce_with_logits_sum(x2, y2, pos_weight, block_bytes=4096) / (B2 * C)
    want2 = _reference(x2, y2, [], pos_weight)
    assert jnp.allclose(got2, want2, rtol=1e-4, atol=1e-4), (got2, want2)

    # Path coverage: lane-sparse fallback (C does not divide 128), ragged + 2-way split.
    B3, C3 = 40, 48
    pw3 = jax.random.uniform(k_pw, (C3,), minval=0.5, maxval=2.0, dtype=jnp.float32)
    x3 = jax.random.normal(k_p1, (B3, C3), dtype=jnp.float32)
    y3 = jax.random.bernoulli(k_p2, 0.5, (B3, C3)).astype(jnp.float32)
    got3 = _bce_with_logits_sum(x3, y3, pw3, block_bytes=4096) / (B3 * C3)
    want3 = _reference(x3, y3, [], pw3)
    assert jnp.allclose(got3, want3, rtol=1e-4, atol=1e-4), (got3, want3)

    # Path coverage: multi-block L1 reduction with ragged last block + 2-way split.
    m = jax.random.normal(k_p3, (50, 128), dtype=jnp.float32)
    got4 = _abs_sum_2d(m, block_bytes=4096)
    want4 = jnp.sum(jnp.abs(m))
    assert jnp.allclose(got4, want4, rtol=1e-4, atol=1e-4), (got4, want4)

    print("KERNEL_OK")
</pallas_src>

<mosaic_0001>
module attributes {stable_mosaic.version = 11 : i64} {
  func.func @_abs_sum_kernel(%arg0: i32, %arg1: i32, %arg2: memref<19x128xf32, #tpu.memory_space<vmem>>, %arg3: memref<1x1x128xf32, #tpu.memory_space<vmem>>, %arg4: memref<1x1x128xf32, #tpu.memory_space<vmem>>) attributes {dimension_semantics = [#tpu.dimension_semantics<parallel>, #tpu.dimension_semantics<arbitrary>], iteration_bounds = array<i64: 1, 1>, scalar_prefetch = 0 : i64, scratch_operands = 1 : i64, tpu.core_type = #tpu.core_type<tc>, window_params = [{transform_indices = @transform_0, window_bounds = array<i64: 19, 128>}, {transform_indices = @transform_1, window_bounds = array<i64: 1, 1, 128>}]} {
    %c0_i32 = arith.constant 0 : i32
    %0 = arith.cmpi eq, %arg1, %c0_i32 : i32
    %1 = arith.extui %0 : i1 to i32
    %c0_i32_0 = arith.constant 0 : i32
    %2 = arith.cmpi ne, %1, %c0_i32_0 : i32
    scf.if %2 {
      %cst_10 = arith.constant 0.000000e+00 : f32
      %14 = vector.broadcast %cst_10 : f32 to vector<1x1x128xf32>
      %c0_11 = arith.constant 0 : index
      %c0_12 = arith.constant 0 : index
      %c0_13 = arith.constant 0 : index
      %15 = vector.load %arg4[%c0_11, %c0_12, %c0_13] : memref<1x1x128xf32, #tpu.memory_space<vmem>>, vector<1x1x128xf32>
      tpu.vector_store %arg4[%c0_11, %c0_12, %c0_13], %14 {strides = array<i32>} : memref<1x1x128xf32, #tpu.memory_space<vmem>>, vector<1x1x128xf32>,
    } else {
    }
    %c0 = arith.constant 0 : index
    %c0_1 = arith.constant 0 : index
    %3 = vector.load %arg2[%c0, %c0_1] : memref<19x128xf32, #tpu.memory_space<vmem>>, vector<19x128xf32>
    %4 = math.absf %3 : vector<19x128xf32>
    %c0_2 = arith.constant 0 : index
    %c0_3 = arith.constant 0 : index
    %c0_4 = arith.constant 0 : index
    %5 = vector.load %arg4[%c0_2, %c0_3, %c0_4] : memref<1x1x128xf32, #tpu.memory_space<vmem>>, vector<1x1x128xf32>
    %cst = arith.constant dense<0.000000e+00> : vector<128xf32>
    %6 = vector.multi_reduction <add>, %4, %cst [0] : vector<19x128xf32> to vector<128xf32>
    %7 = vector.shape_cast %6 : vector<128xf32> to vector<1x128xf32>
    %8 = vector.shape_cast %7 : vector<1x128xf32> to vector<1x1x128xf32>
    %9 = arith.addf %5, %8 : vector<1x1x128xf32>
    %c0_5 = arith.constant 0 : index
    %c0_6 = arith.constant 0 : index
    %c0_7 = arith.constant 0 : index
    %10 = vector.load %arg4[%c0_5, %c0_6, %c0_7] : memref<1x1x128xf32, #tpu.memory_space<vmem>>, vector<1x1x128xf32>
    tpu.vector_store %arg4[%c0_5, %c0_6, %c0_7], %9 {strides = array<i32>} : memref<1x1x128xf32, #tpu.memory_space<vmem>>, vector<1x1x128xf32>,
    %c0_i32_8 = arith.constant 0 : i32
    %11 = arith.cmpi eq, %arg1, %c0_i32_8 : i32
    %12 = arith.extui %11 : i1 to i32
    %c0_i32_9 = arith.constant 0 : i32
    %13 = arith.cmpi ne, %12, %c0_i32_9 : i32
    scf.if %13 {
      %c0_10 = arith.constant 0 : index
      %c0_11 = arith.constant 0 : index
      %c0_12 = arith.constant 0 : index
      %14 = vector.load %arg4[%c0_10, %c0_11, %c0_12] : memref<1x1x128xf32, #tpu.memory_space<vmem>>, vector<1x1x128xf32>
      %c0_13 = arith.constant 0 : index
      %c0_14 = arith.constant 0 : index
      %c0_15 = arith.constant 0 : index
      %15 = vector.load %arg3[%c0_13, %c0_14, %c0_15] : memref<1x1x128xf32, #tpu.memory_space<vmem>>, vector<1x1x128xf32>
      tpu.vector_store %arg3[%c0_13, %c0_14, %c0_15], %14 {strides = array<i32>} : memref<1x1x128xf32, #tpu.memory_space<vmem>>, vector<1x1x128xf32>,
    } else {
    }
    return
  }
  func.func @transform_0(%arg0: i32, %arg1: i32) -> (i32, i32) {
    %c1_i32 = arith.constant 1 : i32
    %0 = arith.muli %arg0, %c1_i32 : i32
    %1 = arith.addi %0, %arg1 : i32
    %c0_i32 = arith.constant 0 : i32
    %c0_i32_0 = arith.constant 0 : i32
    return %1, %c0_i32 : i32, i32
  }
  func.func @transform_1(%arg0: i32, %arg1: i32) -> (i32, i32, i32) {
    %c0_i32 = arith.constant 0 : i32
    %c0_i32_0 = arith.constant 0 : i32
    %c0_i32_1 = arith.constant 0 : i32
    return %arg0, %c0_i32, %c0_i32_0 : i32, i32, i32
  }
}

module attributes {stable_mosaic.version = 11 : i64} {
  func.func @_bce_sum_kernel(%arg0: i32, %arg1: i32, %arg2: memref<4x128xf32, #tpu.memory_space<vmem>>, %arg3: memref<4x128xf32, #tpu.memory_space<vmem>>, %arg4: memref<1x128xf32, #tpu.memory_space<vmem>>, %arg5: memref<1x1x128xf32, #tpu.memory_space<vmem>>, %arg6: memref<1x1x128xf32, #tpu.memory_space<vmem>>) attributes {dimension_semantics = [#tpu.dimension_semantics<parallel>, #tpu.dimension_semantics<arbitrary>], iteration_bounds = array<i64: 1, 1>, scalar_prefetch = 0 : i64, scratch_operands = 1 : i64, tpu.core_type = #tpu.core_type<tc>, window_params = [{transform_indices = @transform_0, window_bounds = array<i64: 4, 128>}, {transform_indices = @transform_1, window_bounds = array<i64: 4, 128>}, {pipeline_mode = #tpu.pipeline_mode<synchronous>, transform_indices = @transform_2, window_bounds = array<i64: 1, 128>}, {transform_indices = @transform_3, window_bounds = array<i64: 1, 1, 128>}]} {
    %c0_i32 = arith.constant 0 : i32
    %0 = arith.cmpi eq, %arg1, %c0_i32 : i32
    %1 = arith.extui %0 : i1 to i32
    %c0_i32_0 = arith.constant 0 : i32
    %2 = arith.cmpi ne, %1, %c0_i32_0 : i32
    scf.if %2 {
      %cst_18 = arith.constant 0.000000e+00 : f32
      %33 = vector.broadcast %cst_18 : f32 to vector<1x1x128xf32>
      %c0_19 = arith.constant 0 : index
      %c0_20 = arith.constant 0 : index
      %c0_21 = arith.constant 0 : index
      %34 = vector.load %arg6[%c0_19, %c0_20, %c0_21] : memref<1x1x128xf32, #tpu.memory_space<vmem>>, vector<1x1x128xf32>
      tpu.vector_store %arg6[%c0_19, %c0_20, %c0_21], %33 {strides = array<i32>} : memref<1x1x128xf32, #tpu.memory_space<vmem>>, vector<1x1x128xf32>,
    } else {
    }
    %c0 = arith.constant 0 : index
    %c0_1 = arith.constant 0 : index
    %3 = vector.load %arg2[%c0, %c0_1] : memref<4x128xf32, #tpu.memory_space<vmem>>, vector<4x128xf32>
    %c0_2 = arith.constant 0 : index
    %c0_3 = arith.constant 0 : index
    %4 = vector.load %arg3[%c0_2, %c0_3] : memref<4x128xf32, #tpu.memory_space<vmem>>, vector<4x128xf32>
    %c0_4 = arith.constant 0 : index
    %c0_5 = arith.constant 0 : index
    %5 = vector.load %arg4[%c0_4, %c0_5] : memref<1x128xf32, #tpu.memory_space<vmem>>, vector<1x128xf32>
    %cst = arith.constant 0.000000e+00 : f32
    %6 = vector.broadcast %cst : f32 to vector<4x128xf32>
    %7 = arith.maximumf %3, %6 : vector<4x128xf32>
    %8 = math.absf %3 : vector<4x128xf32>
    %cst_6 = arith.constant 0.000000e+00 : f32
    %9 = vector.broadcast %cst_6 : f32 to vector<4x128xf32>
    %10 = arith.subf %9, %8 : vector<4x128xf32>
    %11 = math.exp %10 : vector<4x128xf32>
    %cst_7 = arith.constant 1.000000e+00 : f32
    %12 = vector.broadcast %cst_7 : f32 to vector<4x128xf32>
    %13 = arith.addf %12, %11 : vector<4x128xf32>
    %14 = math.log %13 : vector<4x128xf32>
    %15 = arith.addf %7, %14 : vector<4x128xf32>
    %16 = vector.broadcast %5 : vector<1x128xf32> to vector<4x128xf32>
    %17 = arith.mulf %16, %4 : vector<4x128xf32>
    %18 = arith.subf %15, %3 : vector<4x128xf32>
    %19 = arith.mulf %17, %18 : vector<4x128xf32>
    %cst_8 = arith.constant 1.000000e+00 : f32
    %20 = vector.broadcast %cst_8 : f32 to vector<4x128xf32>
    %21 = arith.subf %20, %4 : vector<4x128xf32>
    %22 = arith.mulf %21, %15 : vector<4x128xf32>
    %23 = arith.addf %19, %22 : vector<4x128xf32>
    %c0_9 = arith.constant 0 : index
    %c0_10 = arith.constant 0 : index
    %c0_11 = arith.constant 0 : index
    %24 = vector.load %arg6[%c0_9, %c0_10, %c0_11] : memref<1x1x128xf32, #tpu.memory_space<vmem>>, vector<1x1x128xf32>
    %cst_12 = arith.constant dense<0.000000e+00> : vector<128xf32>
    %25 = vector.multi_reduction <add>, %23, %cst_12 [0] : vector<4x128xf32> to vector<128xf32>
    %26 = vector.shape_cast %25 : vector<128xf32> to vector<1x128xf32>
    %27 = vector.shape_cast %26 : vector<1x128xf32> to vector<1x1x128xf32>
    %28 = arith.addf %24, %27 : vector<1x1x128xf32>
    %c0_13 = arith.constant 0 : index
    %c0_14 = arith.constant 0 : index
    %c0_15 = arith.constant 0 : index
    %29 = vector.load %arg6[%c0_13, %c0_14, %c0_15] : memref<1x1x128xf32, #tpu.memory_space<vmem>>, vector<1x1x128xf32>
    tpu.vector_store %arg6[%c0_13, %c0_14, %c0_15], %28 {strides = array<i32>} : memref<1x1x128xf32, #tpu.memory_space<vmem>>, vector<1x1x128xf32>,
    %c0_i32_16 = arith.constant 0 : i32
    %30 = arith.cmpi eq, %arg1, %c0_i32_16 : i32
    %31 = arith.extui %30 : i1 to i32
    %c0_i32_17 = arith.constant 0 : i32
    %32 = arith.cmpi ne, %31, %c0_i32_17 : i32
    scf.if %32 {
      %c0_18 = arith.constant 0 : index
      %c0_19 = arith.constant 0 : index
      %c0_20 = arith.constant 0 : index
      %33 = vector.load %arg6[%c0_18, %c0_19, %c0_20] : memref<1x1x128xf32, #tpu.memory_space<vmem>>, vector<1x1x128xf32>
      %c0_21 = arith.constant 0 : index
      %c0_22 = arith.constant 0 : index
      %c0_23 = arith.constant 0 : index
      %34 = vector.load %arg5[%c0_21, %c0_22, %c0_23] : memref<1x1x128xf32, #tpu.memory_space<vmem>>, vector<1x1x128xf32>
      tpu.vector_store %arg5[%c0_21, %c0_22, %c0_23], %33 {strides = array<i32>} : memref<1x1x128xf32, #tpu.memory_space<vmem>>, vector<1x1x128xf32>,
    } else {
    }
    return
  }
  func.func @transform_0(%arg0: i32, %arg1: i32) -> (i32, i32) {
    %c1_i32 = arith.constant 1 : i32
    %0 = arith.muli %arg0, %c1_i32 : i32
    %1 = arith.addi %0, %arg1 : i32
    %c0_i32 = arith.constant 0 : i32
    %c0_i32_0 = arith.constant 0 : i32
    return %1, %c0_i32 : i32, i32
  }
  func.func @transform_1(%arg0: i32, %arg1: i32) -> (i32, i32) {
    %c1_i32 = arith.constant 1 : i32
    %0 = arith.muli %arg0, %c1_i32 : i32
    %1 = arith.addi %0, %arg1 : i32
    %c0_i32 = arith.constant 0 : i32
    %c0_i32_0 = arith.constant 0 : i32
    return %1, %c0_i32 : i32, i32
  }
  func.func @transform_2(%arg0: i32, %arg1: i32) -> (i32, i32) {
    %c0_i32 = arith.constant 0 : i32
    %c0_i32_0 = arith.constant 0 : i32
    %c0_i32_1 = arith.constant 0 : i32
    return %c0_i32, %c0_i32_0 : i32, i32
  }
  func.func @transform_3(%arg0: i32, %arg1: i32) -> (i32, i32, i32) {
    %c0_i32 = arith.constant 0 : i32
    %c0_i32_0 = arith.constant 0 : i32
    %c0_i32_1 = arith.constant 0 : i32
    return %arg0, %c0_i32, %c0_i32_0 : i32, i32, i32
  }
}

module attributes {stable_mosaic.version = 11 : i64} {
  func.func @_abs_sum_kernel(%arg0: i32, %arg1: i32, %arg2: memref<64x128xf32, #tpu.memory_space<vmem>>, %arg3: memref<1x1x128xf32, #tpu.memory_space<vmem>>, %arg4: memref<1x1x128xf32, #tpu.memory_space<vmem>>) attributes {dimension_semantics = [#tpu.dimension_semantics<parallel>, #tpu.dimension_semantics<arbitrary>], iteration_bounds = array<i64: 1, 1>, scalar_prefetch = 0 : i64, scratch_operands = 1 : i64, tpu.core_type = #tpu.core_type<tc>, window_params = [{transform_indices = @transform_0, window_bounds = array<i64: 64, 128>}, {transform_indices = @transform_1, window_bounds = array<i64: 1, 1, 128>}]} {
    %c0_i32 = arith.constant 0 : i32
    %0 = arith.cmpi eq, %arg1, %c0_i32 : i32
    %1 = arith.extui %0 : i1 to i32
    %c0_i32_0 = arith.constant 0 : i32
    %2 = arith.cmpi ne, %1, %c0_i32_0 : i32
    scf.if %2 {
      %cst_10 = arith.constant 0.000000e+00 : f32
      %14 = vector.broadcast %cst_10 : f32 to vector<1x1x128xf32>
      %c0_11 = arith.constant 0 : index
      %c0_12 = arith.constant 0 : index
      %c0_13 = arith.constant 0 : index
      %15 = vector.load %arg4[%c0_11, %c0_12, %c0_13] : memref<1x1x128xf32, #tpu.memory_space<vmem>>, vector<1x1x128xf32>
      tpu.vector_store %arg4[%c0_11, %c0_12, %c0_13], %14 {strides = array<i32>} : memref<1x1x128xf32, #tpu.memory_space<vmem>>, vector<1x1x128xf32>,
    } else {
    }
    %c0 = arith.constant 0 : index
    %c0_1 = arith.constant 0 : index
    %3 = vector.load %arg2[%c0, %c0_1] : memref<64x128xf32, #tpu.memory_space<vmem>>, vector<64x128xf32>
    %4 = math.absf %3 : vector<64x128xf32>
    %c0_2 = arith.constant 0 : index
    %c0_3 = arith.constant 0 : index
    %c0_4 = arith.constant 0 : index
    %5 = vector.load %arg4[%c0_2, %c0_3, %c0_4] : memref<1x1x128xf32, #tpu.memory_space<vmem>>, vector<1x1x128xf32>
    %cst = arith.constant dense<0.000000e+00> : vector<128xf32>
    %6 = vector.multi_reduction <add>, %4, %cst [0] : vector<64x128xf32> to vector<128xf32>
    %7 = vector.shape_cast %6 : vector<128xf32> to vector<1x128xf32>
    %8 = vector.shape_cast %7 : vector<1x128xf32> to vector<1x1x128xf32>
    %9 = arith.addf %5, %8 : vector<1x1x128xf32>
    %c0_5 = arith.constant 0 : index
    %c0_6 = arith.constant 0 : index
    %c0_7 = arith.constant 0 : index
    %10 = vector.load %arg4[%c0_5, %c0_6, %c0_7] : memref<1x1x128xf32, #tpu.memory_space<vmem>>, vector<1x1x128xf32>
    tpu.vector_store %arg4[%c0_5, %c0_6, %c0_7], %9 {strides = array<i32>} : memref<1x1x128xf32, #tpu.memory_space<vmem>>, vector<1x1x128xf32>,
    %c0_i32_8 = arith.constant 0 : i32
    %11 = arith.cmpi eq, %arg1, %c0_i32_8 : i32
    %12 = arith.extui %11 : i1 to i32
    %c0_i32_9 = arith.constant 0 : i32
    %13 = arith.cmpi ne, %12, %c0_i32_9 : i32
    scf.if %13 {
      %c0_10 = arith.constant 0 : index
      %c0_11 = arith.constant 0 : index
      %c0_12 = arith.constant 0 : index
      %14 = vector.load %arg4[%c0_10, %c0_11, %c0_12] : memref<1x1x128xf32, #tpu.memory_space<vmem>>, vector<1x1x128xf32>
      %c0_13 = arith.constant 0 : index
      %c0_14 = arith.constant 0 : index
      %c0_15 = arith.constant 0 : index
      %15 = vector.load %arg3[%c0_13, %c0_14, %c0_15] : memref<1x1x128xf32, #tpu.memory_space<vmem>>, vector<1x1x128xf32>
      tpu.vector_store %arg3[%c0_13, %c0_14, %c0_15], %14 {strides = array<i32>} : memref<1x1x128xf32, #tpu.memory_space<vmem>>, vector<1x1x128xf32>,
    } else {
    }
    return
  }
  func.func @transform_0(%arg0: i32, %arg1: i32) -> (i32, i32) {
    %c1_i32 = arith.constant 1 : i32
    %0 = arith.muli %arg0, %c1_i32 : i32
    %1 = arith.addi %0, %arg1 : i32
    %c0_i32 = arith.constant 0 : i32
    %c0_i32_0 = arith.constant 0 : i32
    return %1, %c0_i32 : i32, i32
  }
  func.func @transform_1(%arg0: i32, %arg1: i32) -> (i32, i32, i32) {
    %c0_i32 = arith.constant 0 : i32
    %c0_i32_0 = arith.constant 0 : i32
    %c0_i32_1 = arith.constant 0 : i32
    return %arg0, %c0_i32, %c0_i32_0 : i32, i32, i32
  }
}

</mosaic_0001>

<bundles_post_ra>
// kernel: tile.8
= control target key start
LH: loop header
LB: loop body
LE: loop exit
PB: predicated region body
PF: predicated region fallthrough
CT: control target
= control target key end

     0   :  { %s22_s0 = inlined_call_operand.vmem [shape: f32[32], index: 0, kind: input, shape index: {}]   ;;  %s23_s1 = inlined_call_operand.vmem [shape: f32[4,32], index: 1, kind: output, shape index: {}]  }
   0x1   :  { %v4_v0 = vld [vmem:[%s22_s0] ss:$0 sm:$0xff] }
   0x2   :  { %5 = vst [vmem:[%s23_s1] sm:$0xf] %v4_v0 }

// kernel: tile.9
= control target key start
LH: loop header
LB: loop body
LE: loop exit
PB: predicated region body
PF: predicated region fallthrough
CT: control target
= control target key end

     0   :  { %vm7_vm0 = vcmask 261120   ;;  %s37_s8 = smov 32   ;;  %s38_s9 = smov 64   ;;  %vm13_vm1 = vcmask 1048320   ;;  %vm19_vm2 = vcmask 785920   ;;  %vm25_vm3 = vcmask 523520   ;;  %s55_s0 = inlined_call_operand.vmem [shape: f32[4,32], index: 0, kind: input, shape index: {}]   ;;  %s56_s1 = inlined_call_operand.vmem [shape: f32[1,128], index: 1, kind: output, shape index: {}]  }
   0x1   :  { %v4_v0 = vld [vmem:[%s55_s0] sm:$0xf]  ;;  %s36_s0 = smov 96  }
   0x2   :  { %5 = vst [vmem:[#allocation1] sm:$0xf] %v4_v0 }
   0x9   :  { %v10_v1 = vld [vmem:[#allocation1 + $0x3] sm:$0x1]   ;;  %v22_v2 = vld [vmem:[#allocation1 + $0x1] sm:$0x1]   ;;  %v6_v3 = vld [vmem:[#allocation1] sm:$0x1]  }
   0xa   :  { %11 = vrot.lane.b32.xlu0 %v10_v1, %s36_s0  ;;  %23 = vrot.lane.b32.xlu1 %v22_v2, %s37_s8  ;;  %v16_v4 = vld [vmem:[#allocation1 + $0x2] sm:$0x1]   ;;  %8 = vst.msk [vmem:[#allocation0] sm:$0x1] %vm7_vm0, %v6_v3  }
   0xe   :  { %17 = vrot.lane.b32.xlu0 %v16_v4, %s38_s9 }
  0x7c   :  { %v12_v5 = vpop.permute.xlu0 %11   ;;  %v24_v6 = vpop.permute.xlu1 %23  }
  0x7d   :  { %14 = vst.msk [vmem:[#allocation0] sm:$0x1] %vm13_vm1, %v12_v5  }
  0x80   :  { %v18_v7 = vpop.permute.xlu0 %17  }
  0x81   :  { %20 = vst.msk [vmem:[#allocation0] sm:$0x1] %vm19_vm2, %v18_v7  }
  0x82   :  { %26 = vst.msk [vmem:[#allocation0] sm:$0x1] %vm25_vm3, %v24_v6  }
  0x89   :  { %v30_v8 = vld [vmem:[#allocation0] sm:$0x1] }
  0x8a   :  { %32 = vst [vmem:[%s56_s1] sm:$0x1] %v30_v8 }

// kernel: bce_l1_reg_loss.3
= control target key start
LH: loop header
LB: loop body
LE: loop exit
PB: predicated region body
PF: predicated region fallthrough
CT: control target
= control target key end

     0   :  { %v115_v0 = vmov 0.0   ;;  %vm78_vm0 = vcmask 1043456   ;;  %s148_s0 = inlined_call_operand.vmem [shape: f32[4,128], index: 0, kind: input, shape index: {}]   ;;  %s149_s1 = inlined_call_operand.vmem [shape: f32[4,128], index: 1, kind: input, shape index: {}]   ;;  %s150_s2 = inlined_call_operand.vmem [shape: f32[1,128], index: 2, kind: input, shape index: {}]   ;;  %s151_s3 = inlined_call_operand.vmem [shape: f32[1,1,128], index: 3, kind: output, shape index: {}]  }
   0x1   :  { %52 = vst [vmem:[#allocation2] sm:$0x1] %v115_v0  ;;  %v53_v1 = vld [vmem:[%s148_s0] sm:$0xf] }
   0x2   :  { %v57_v2 = vand.u32 2147483647, %v53_v1  ;;  %v54_v7 = vld [vmem:[%s149_s1] sm:$0xf]  ;;  %v56_v8 = vmax.f32 %v53_v1, 0.0 }
   0x3   :  { %v109_v10 = vld [vmem:[%s150_s2] ss:$0 sm:$0xff]  ;;  %v74_v12 = vsub.f32 1.0, %v54_v7 }
   0x4   :  { %v58_v3 = vsub.f32 0.0, %v57_v2  ;;  %v71_v14 = vmul.f32 %v109_v10, %v54_v7 }
   0x6   :  { %v59_v4 = vmul.f32 1.442695, %v58_v3 }
   0x8   :  { %111 = vpow2.f32 %v59_v4  ;;  %v77_v25 = vld [vmem:[#allocation2] sm:$0x1] }
  0x12   :  { %v112_v5 = vpop.eup %111 }
  0x13   :  { %v61_v6 = vadd.f32 1.0, %v112_v5 }
  0x15   :  { %113 = vlog2.f32 %v61_v6 }
  0x1f   :  { %v114_v9 = vpop.eup %113 }
  0x20   :  { %v63_v11 = vmul.f32 0.6931472, %v114_v9 }
  0x22   :  { %v64_v13 = vadd.f32 %v63_v11, %v56_v8 }
  0x24   :  { %v72_v15 = vsub.f32 %v64_v13, %v53_v1  ;;  %v75_v16 = vmul.f32 %v74_v12, %v64_v13 }
  0x26   :  { %v73_v17 = vmul.f32 %v72_v15, %v71_v14 }
  0x28   :  { %v76_v18 = vadd.f32 %v75_v16, %v73_v17 }
  0x2a   :  { %v79_v19 = vsel %vm78_vm0, %v76_v18, 0.0 }
  0x2b   :  { %v80_v20 = vrot.slane %v79_v19, 4 }
  0x2d   :  { %v81_v21 = vadd.f32 %v80_v20, %v79_v19 }
  0x2f   :  { %v82_v22 = vrot.slane %v81_v21, 2 }
  0x31   :  { %v83_v23 = vadd.f32 %v82_v22, %v81_v21 }
  0x33   :  { %v84_v24 = vrot.slane %v83_v23, 1 }
  0x35   :  { %v85_v26 = vadd.f32 %v84_v24, %v83_v23 }
  0x37   :  { %v86_v27 = vadd.f32 %v85_v26, %v77_v25 }
  0x39   :  { %87 = vst [vmem:[#allocation2] sm:$0x1] %v86_v27 }
  0x40   :  { %v91_v28 = vld [vmem:[#allocation2] sm:$0x1] }
  0x41   :  { %92 = vst [vmem:[%s151_s3] sm:$0x1] %v91_v28 }

// kernel: bce_l1_reg_loss.5
= control target key start
LH: loop header
LB: loop body
LE: loop exit
PB: predicated region body
PF: predicated region fallthrough
CT: control target
= control target key end

     0   :  { %v70_v0 = vmov 0.0   ;;  %vm43_vm0 = vcmask 1042432   ;;  %s93_s0 = inlined_call_operand.vmem [shape: f32[19,128], index: 0, kind: input, shape index: {}]   ;;  %s94_s1 = inlined_call_operand.vmem [shape: f32[1,1,128], index: 1, kind: output, shape index: {}]  }
   0x1   :  { %34 = vst [vmem:[#allocation2] sm:$0x1] %v70_v0  ;;  %v35_v1 = vld [vmem:[%s93_s0] sm:$0xff]  ;;  %v36_v2 = vld [vmem:[%s93_s0 + $0x8] sm:$0xff]  ;;  %v37_v3 = vld [vmem:[%s93_s0 + $0x10] sm:$0x7] }
   0x2   :  { %v38_v4 = vand.u32 2147483647, %v35_v1  ;;  %v39_v5 = vand.u32 2147483647, %v36_v2  ;;  %v40_v6 = vand.u32 2147483647, %v37_v3 }
   0x4   :  { %v42_v7 = vadd.f32 %v39_v5, %v38_v4  ;;  %v44_v8 = vsel %vm43_vm0, %v40_v6, 0.0 }
   0x6   :  { %v45_v9 = vadd.f32 %v44_v8, %v42_v7 }
   0x8   :  { %v46_v10 = vrot.slane %v45_v9, 4  ;;  %v41_v15 = vld [vmem:[#allocation2] sm:$0x1] }
   0xa   :  { %v47_v11 = vadd.f32 %v46_v10, %v45_v9 }
   0xc   :  { %v48_v12 = vrot.slane %v47_v11, 2 }
   0xe   :  { %v49_v13 = vadd.f32 %v48_v12, %v47_v11 }
  0x10   :  { %v50_v14 = vrot.slane %v49_v13, 1 }
  0x12   :  { %v51_v16 = vadd.f32 %v50_v14, %v49_v13 }
  0x14   :  { %v52_v17 = vadd.f32 %v51_v16, %v41_v15 }
  0x16   :  { %53 = vst [vmem:[#allocation2] sm:$0x1] %v52_v17 }
  0x1d   :  { %v57_v18 = vld [vmem:[#allocation2] sm:$0x1] }
  0x1e   :  { %58 = vst [vmem:[%s94_s1] sm:$0x1] %v57_v18 }

// kernel: bce_l1_reg_loss.4
= control target key start
LH: loop header
LB: loop body
LE: loop exit
PB: predicated region body
PF: predicated region fallthrough
CT: control target
= control target key end

     0   :  { %v83_v0 = vmov 0.0   ;;  %s121_s0 = inlined_call_operand.vmem [shape: f32[64,128], index: 0, kind: input, shape index: {}]   ;;  %s122_s1 = inlined_call_operand.vmem [shape: f32[1,1,128], index: 1, kind: output, shape index: {}]  }
   0x1   :  { %34 = vst [vmem:[#allocation2] sm:$0x1] %v83_v0  ;;  %v35_v1 = vld [vmem:[%s121_s0] sm:$0xff]  ;;  %v36_v2 = vld [vmem:[%s121_s0 + $0x8] sm:$0xff]  ;;  %v37_v3 = vld [vmem:[%s121_s0 + $0x10] sm:$0xff] }
   0x2   :  { %v38_v4 = vld [vmem:[%s121_s0 + $0x18] sm:$0xff]  ;;  %v43_v5 = vand.u32 2147483647, %v35_v1  ;;  %v44_v6 = vand.u32 2147483647, %v36_v2  ;;  %v39_v8 = vld [vmem:[%s121_s0 + $0x20] sm:$0xff] }
   0x3   :  { %v45_v7 = vand.u32 2147483647, %v37_v3  ;;  %v46_v9 = vand.u32 2147483647, %v38_v4  ;;  %v40_v11 = vld [vmem:[%s121_s0 + $0x28] sm:$0xff]  ;;  %v41_v14 = vld [vmem:[%s121_s0 + $0x30] sm:$0xff] }
   0x4   :  { %v52_v10 = vadd.f32 %v44_v6, %v43_v5  ;;  %v47_v12 = vand.u32 2147483647, %v39_v8  ;;  %v48_v15 = vand.u32 2147483647, %v40_v11  ;;  %v42_v17 = vld [vmem:[%s121_s0 + $0x38] sm:$0xff] }
   0x5   :  { %v49_v18 = vand.u32 2147483647, %v41_v14  ;;  %v50_v20 = vand.u32 2147483647, %v42_v17 }
   0x6   :  { %v53_v13 = vadd.f32 %v52_v10, %v45_v7 }
   0x8   :  { %v54_v16 = vadd.f32 %v53_v13, %v46_v9  ;;  %v51_v29 = vld [vmem:[#allocation2] sm:$0x1] }
   0xa   :  { %v55_v19 = vadd.f32 %v54_v16, %v47_v12 }
   0xc   :  { %v56_v21 = vadd.f32 %v55_v19, %v48_v15 }
   0xe   :  { %v57_v22 = vadd.f32 %v56_v21, %v49_v18 }
  0x10   :  { %v58_v23 = vadd.f32 %v57_v22, %v50_v20 }
  0x12   :  { %v59_v24 = vrot.slane %v58_v23, 4 }
  0x14   :  { %v60_v25 = vadd.f32 %v59_v24, %v58_v23 }
  0x16   :  { %v61_v26 = vrot.slane %v60_v25, 2 }
  0x18   :  { %v62_v27 = vadd.f32 %v61_v26, %v60_v25 }
  0x1a   :  { %v63_v28 = vrot.slane %v62_v27, 1 }
  0x1c   :  { %v64_v30 = vadd.f32 %v63_v28, %v62_v27 }
  0x1e   :  { %v65_v31 = vadd.f32 %v64_v30, %v51_v29 }
  0x20   :  { %66 = vst [vmem:[#allocation2] sm:$0x1] %v65_v31 }
  0x27   :  { %v70_v32 = vld [vmem:[#allocation2] sm:$0x1] }
  0x28   :  { %71 = vst [vmem:[%s122_s1] sm:$0x1] %v70_v32 }

</bundles_post_ra>
